<compile_context>
chip_gen: v6e
topology: v6e:2x2x1
jax: 0.10.0
libtpu: 0.0.40
codegen_flags: <defaults>
</compile_context>

<pallas_src>
import functools
from typing import NamedTuple

import jax
import jax.numpy as jnp
from jax.experimental import pallas as pl
from jax.experimental.pallas import tpu as pltpu

LN_EPS = 1e-5
LANE = 128
SUBLANE = 8


def _round_up(x, m):
    return ((x + m - 1) // m) * m


# ----------------------------------------------------------------------------
# Kernel
# ----------------------------------------------------------------------------
def policy_kernel(x_ref,
                  w1_ref, b1_ref, g1_ref, be1_ref,
                  w2_ref, b2_ref, g2_ref, be2_ref,
                  w3_ref, b3_ref,
                  out_ref, *, hidden_real, hidden_pad):
    x = x_ref[...]                       # (tile, S) f32
    mm_dtype = w1_ref.dtype              # weights pre-cast once in the wrapper
    tile = x.shape[0]
    inv_h = 1.0 / hidden_real            # true H, not padded H

    if hidden_pad != hidden_real:
        lane = jax.lax.broadcasted_iota(jnp.int32, (tile, hidden_pad), 1)
        valid = lane < hidden_real       # padded lanes excluded from LN stats
    else:
        valid = None

    def layernorm(h, gamma, beta):
        # Two-pass (mean-centered) variance on the real lanes only.
        mean = jnp.sum(h, axis=-1, keepdims=True) * inv_h
        hc = h - mean
        if valid is not None:
            hc = jnp.where(valid, hc, 0.0)
        var = jnp.sum(hc * hc, axis=-1, keepdims=True) * inv_h
        # gamma/beta are 0 in padded lanes -> padded lanes stay exactly 0.
        return hc * jax.lax.rsqrt(var + LN_EPS) * gamma + beta

    def mm(a, w_ref):
        # Only the activation needs an in-kernel cast; f32 accumulation.
        return jnp.dot(a.astype(mm_dtype), w_ref[...],
                       preferred_element_type=jnp.float32)

    # linear1 -> ln1 -> relu
    h = mm(x, w1_ref) + b1_ref[...]
    h = jnp.maximum(layernorm(h, g1_ref[...], be1_ref[...]), 0.0)

    # linear2 -> ln2 -> relu
    h = mm(h, w2_ref) + b2_ref[...]
    h = jnp.maximum(layernorm(h, g2_ref[...], be2_ref[...]), 0.0)

    # linear3 (output padded to 128 lanes) -> tanh ; padded lanes hold tanh(0)=0
    h = mm(h, w3_ref) + b3_ref[...]
    out_ref[...] = jnp.tanh(h)


# ----------------------------------------------------------------------------
# One-time parameter preparation (padding + optional weight cast)
# ----------------------------------------------------------------------------
class PreparedParams(NamedTuple):
    arrays: dict
    num_states: int
    hidden_real: int
    hidden_pad: int
    num_actions: int
    actions_pad: int


def prepare_params(params, *, matmul_dtype=jnp.float32):
    """Pad H and A to 128-multiples and pre-cast weights.  Call once."""
    S, H = params["w1"].shape
    A = params["w3"].shape[1]
    H_pad = _round_up(max(H, LANE), LANE)
    A_pad = _round_up(max(A, LANE), LANE)

    def pad2(x, rows, cols, dtype=jnp.float32):
        out = jnp.zeros((rows, cols), dtype)
        return out.at[:x.shape[0], :x.shape[1]].set(x.astype(dtype))

    arrays = dict(
        w1=pad2(params["w1"], S, H_pad, matmul_dtype),
        b1=pad2(params["b1"], 1, H_pad),
        g1=pad2(params["g1"], 1, H_pad),     # padded gamma lanes are ZERO
        be1=pad2(params["be1"], 1, H_pad),
        w2=pad2(params["w2"], H_pad, H_pad, matmul_dtype),
        b2=pad2(params["b2"], 1, H_pad),
        g2=pad2(params["g2"], 1, H_pad),
        be2=pad2(params["be2"], 1, H_pad),
        w3=pad2(params["w3"], H_pad, A_pad, matmul_dtype),
        b3=pad2(params["b3"], 1, A_pad),
    )
    return PreparedParams(arrays=arrays, num_states=S, hidden_real=H,
                          hidden_pad=H_pad, num_actions=A, actions_pad=A_pad)


# ----------------------------------------------------------------------------
# Forward wrapper
# ----------------------------------------------------------------------------
def policy_forward(state, prepped: PreparedParams, *, tile_b=1024):
    """state: (B, num_states) f32.  prepped: output of prepare_params()."""
    state = jnp.asarray(state, jnp.float32)
    B, S = state.shape
    assert S == prepped.num_states
    p = prepped.arrays
    A_pad = prepped.actions_pad
    H_pad = prepped.hidden_pad

    # --- batch tiling (sublane-aligned) ------------------------------------
    tile = min(_round_up(tile_b, SUBLANE), _round_up(B, SUBLANE))
    # v7x megacore: give the "parallel" axis >= 2 grid steps when batch allows
    # (no-op effect on single-TC v5e/v6e).
    if _round_up(B, SUBLANE) >= 2 * SUBLANE and _round_up(B, tile) // tile < 2:
        tile = _round_up(pl.cdiv(_round_up(B, SUBLANE), 2), SUBLANE)
    B_pad = _round_up(B, tile)
    if B_pad != B:
        state = jnp.zeros((B_pad, S), jnp.float32).at[:B].set(state)
    grid = (B_pad // tile,)

    const = lambda i: (0, 0)    # params stay VMEM-resident across the grid
    row = lambda i: (i, 0)      # batch-tiled arrays

    in_specs = [
        pl.BlockSpec((tile, S), row),
        pl.BlockSpec(p["w1"].shape, const),
        pl.BlockSpec(p["b1"].shape, const),
        pl.BlockSpec(p["g1"].shape, const),
        pl.BlockSpec(p["be1"].shape, const),
        pl.BlockSpec(p["w2"].shape, const),
        pl.BlockSpec(p["b2"].shape, const),
        pl.BlockSpec(p["g2"].shape, const),
        pl.BlockSpec(p["be2"].shape, const),
        pl.BlockSpec(p["w3"].shape, const),
        pl.BlockSpec(p["b3"].shape, const),
    ]
    out_spec = pl.BlockSpec((tile, A_pad), row)

    # --- VMEM budget: params + x/out tiles (x2 default buffering) + acts ---
    nbytes = lambda a: int(a.size) * a.dtype.itemsize
    param_bytes = sum(nbytes(a) for a in p.values())
    tile_io_bytes = 4 * tile * (S + A_pad)
    act_bytes = 8 * tile * H_pad * 4
    needed = 2 * (param_bytes + tile_io_bytes) + act_bytes + (2 << 20)
    vmem_limit = int(min(max(needed, 16 << 20), 60 << 20))  # < v7x 64 MiB

    cost = pl.CostEstimate(
        flops=2 * B_pad * (S * H_pad + H_pad * H_pad + H_pad * A_pad),
        transcendentals=B_pad * (2 + A_pad),             # 2 rsqrt + tanh / row
        bytes_accessed=4 * B_pad * (S + A_pad) + param_bytes,
    )

    kernel = functools.partial(policy_kernel,
                               hidden_real=prepped.hidden_real,
                               hidden_pad=H_pad)

    out = pl.pallas_call(
        kernel,
        out_shape=jax.ShapeDtypeStruct((B_pad, A_pad), jnp.float32),
        grid=grid,
        in_specs=in_specs,
        out_specs=out_spec,
        compiler_params=pltpu.CompilerParams(
            dimension_semantics=("parallel",),
            vmem_limit_bytes=vmem_limit,
        ),
        cost_estimate=cost,
    )(state,
      p["w1"], p["b1"], p["g1"], p["be1"],
      p["w2"], p["b2"], p["g2"], p["be2"],
      p["w3"], p["b3"])

    return out[:B, :prepped.num_actions]


# ----------------------------------------------------------------------------
# Synthetic params + pure-JAX reference (PyTorch forward semantics)
# ----------------------------------------------------------------------------
def init_params(key, num_states, num_actions, hidden_size):
    ks = jax.random.split(key, 6)

    def lin(kw, kb, fan_in, fan_out):
        bound = 1.0 / jnp.sqrt(fan_in)
        w = jax.random.uniform(kw, (fan_in, fan_out), jnp.float32, -bound, bound)
        b = jax.random.uniform(kb, (1, fan_out), jnp.float32, -bound, bound)
        return w, b

    w1, b1 = lin(ks[0], ks[1], num_states, hidden_size)
    w2, b2 = lin(ks[2], ks[3], hidden_size, hidden_size)
    w3, b3 = lin(ks[4], ks[5], hidden_size, num_actions)

    return dict(
        w1=w1, b1=b1,
        g1=jnp.ones((1, hidden_size), jnp.float32),
        be1=jnp.zeros((1, hidden_size), jnp.float32),
        w2=w2, b2=b2,
        g2=jnp.ones((1, hidden_size), jnp.float32),
        be2=jnp.zeros((1, hidden_size), jnp.float32),
        w3=w3, b3=b3,
    )


def _ref_layernorm(h, gamma, beta):
    mu = jnp.mean(h, axis=-1, keepdims=True)
    var = jnp.mean((h - mu) * (h - mu), axis=-1, keepdims=True)
    return (h - mu) * jax.lax.rsqrt(var + LN_EPS) * gamma + beta


def _ref_forward(state, p):
    h = state @ p["w1"] + p["b1"]
    h = jnp.maximum(_ref_layernorm(h, p["g1"], p["be1"]), 0.0)
    h = h @ p["w2"] + p["b2"]
    h = jnp.maximum(_ref_layernorm(h, p["g2"], p["be2"]), 0.0)
    return jnp.tanh(h @ p["w3"] + p["b3"])


if __name__ == "__main__":
    num_states, num_actions, hidden_size, batch = 16, 4, 32, 2

    key = jax.random.PRNGKey(0)
    k_state, k_params = jax.random.split(key)

    state = jax.random.normal(k_state, (batch, num_states), jnp.float32)
    params = init_params(k_params, num_states, num_actions, hidden_size)

    ref = _ref_forward(state, params)

    # f32 MXU path (default; also the right choice on v5e): strict check.
    prepped_f32 = prepare_params(params)                       # one-time
    out = jax.block_until_ready(policy_forward(state, prepped_f32))
    assert out.shape == (batch, num_actions)
    assert jnp.all(jnp.abs(out) <= 1.0)
    assert jnp.allclose(out, ref, atol=1e-4, rtol=1e-4), \
        float(jnp.max(jnp.abs(out - ref)))

    # bf16-weight MXU path (v6e/v7x speed path): loose check.
    prepped_bf16 = prepare_params(params, matmul_dtype=jnp.bfloat16)
    out_bf16 = jax.block_until_ready(policy_forward(state, prepped_bf16))
    assert jnp.allclose(out_bf16, ref, atol=5e-2, rtol=5e-2)

    print("KERNEL_OK")
</pallas_src>

<mosaic_0001>
module attributes {stable_mosaic.version = 11 : i64} {
  func.func @policy_kernel(%arg0: i32, %arg1: memref<8x16xf32, #tpu.memory_space<vmem>>, %arg2: memref<16x128xf32, #tpu.memory_space<vmem>>, %arg3: memref<1x128xf32, #tpu.memory_space<vmem>>, %arg4: memref<1x128xf32, #tpu.memory_space<vmem>>, %arg5: memref<1x128xf32, #tpu.memory_space<vmem>>, %arg6: memref<128x128xf32, #tpu.memory_space<vmem>>, %arg7: memref<1x128xf32, #tpu.memory_space<vmem>>, %arg8: memref<1x128xf32, #tpu.memory_space<vmem>>, %arg9: memref<1x128xf32, #tpu.memory_space<vmem>>, %arg10: memref<128x128xf32, #tpu.memory_space<vmem>>, %arg11: memref<1x128xf32, #tpu.memory_space<vmem>>, %arg12: memref<8x128xf32, #tpu.memory_space<vmem>>) attributes {dimension_semantics = [#tpu.dimension_semantics<parallel>], iteration_bounds = array<i64: 1>, scalar_prefetch = 0 : i64, scratch_operands = 0 : i64, tpu.core_type = #tpu.core_type<tc>, window_params = [{transform_indices = @transform_0, window_bounds = array<i64: 8, 16>}, {pipeline_mode = #tpu.pipeline_mode<synchronous>, transform_indices = @transform_1, window_bounds = array<i64: 16, 128>}, {pipeline_mode = #tpu.pipeline_mode<synchronous>, transform_indices = @transform_2, window_bounds = array<i64: 1, 128>}, {pipeline_mode = #tpu.pipeline_mode<synchronous>, transform_indices = @transform_3, window_bounds = array<i64: 1, 128>}, {pipeline_mode = #tpu.pipeline_mode<synchronous>, transform_indices = @transform_4, window_bounds = array<i64: 1, 128>}, {pipeline_mode = #tpu.pipeline_mode<synchronous>, transform_indices = @transform_5, window_bounds = array<i64: 128, 128>}, {pipeline_mode = #tpu.pipeline_mode<synchronous>, transform_indices = @transform_6, window_bounds = array<i64: 1, 128>}, {pipeline_mode = #tpu.pipeline_mode<synchronous>, transform_indices = @transform_7, window_bounds = array<i64: 1, 128>}, {pipeline_mode = #tpu.pipeline_mode<synchronous>, transform_indices = @transform_8, window_bounds = array<i64: 1, 128>}, {pipeline_mode = #tpu.pipeline_mode<synchronous>, transform_indices = @transform_9, window_bounds = array<i64: 128, 128>}, {pipeline_mode = #tpu.pipeline_mode<synchronous>, transform_indices = @transform_10, window_bounds = array<i64: 1, 128>}, {transform_indices = @transform_11, window_bounds = array<i64: 8, 128>}]} {
    %c0 = arith.constant 0 : index
    %c0_0 = arith.constant 0 : index
    %0 = vector.load %arg1[%c0, %c0_0] : memref<8x16xf32, #tpu.memory_space<vmem>>, vector<8x16xf32>
    %1 = tpu.iota {dimensions = array<i32: 1>} : vector<8x128xi32>
    %c32_i32 = arith.constant 32 : i32
    %2 = vector.broadcast %c32_i32 : i32 to vector<8x128xi32>
    %3 = arith.cmpi slt, %1, %2 : vector<8x128xi32>
    %c0_1 = arith.constant 0 : index
    %c0_2 = arith.constant 0 : index
    %4 = vector.load %arg2[%c0_1, %c0_2] : memref<16x128xf32, #tpu.memory_space<vmem>>, vector<16x128xf32>
    %cst = arith.constant dense<0.000000e+00> : vector<8x128xf32>
    %5 = tpu.matmul %0, %4, %cst {dimension_numbers = #tpu.dot_dimension_numbers<[1], [0], [0], [1], [0, 0, 1, 1], [], []>} : vector<8x16xf32>, vector<16x128xf32>, vector<8x128xf32> -> vector<8x128xf32>
    %c0_3 = arith.constant 0 : index
    %c0_4 = arith.constant 0 : index
    %6 = vector.load %arg3[%c0_3, %c0_4] : memref<1x128xf32, #tpu.memory_space<vmem>>, vector<1x128xf32>
    %7 = vector.broadcast %6 : vector<1x128xf32> to vector<8x128xf32>
    %8 = arith.addf %5, %7 : vector<8x128xf32>
    %c0_5 = arith.constant 0 : index
    %c0_6 = arith.constant 0 : index
    %9 = vector.load %arg4[%c0_5, %c0_6] : memref<1x128xf32, #tpu.memory_space<vmem>>, vector<1x128xf32>
    %c0_7 = arith.constant 0 : index
    %c0_8 = arith.constant 0 : index
    %10 = vector.load %arg5[%c0_7, %c0_8] : memref<1x128xf32, #tpu.memory_space<vmem>>, vector<1x128xf32>
    %cst_9 = arith.constant dense<0.000000e+00> : vector<8xf32>
    %11 = vector.multi_reduction <add>, %8, %cst_9 [1] : vector<8x128xf32> to vector<8xf32>
    %12 = vector.shape_cast %11 : vector<8xf32> to vector<8x1xf32>
    %cst_10 = arith.constant 3.125000e-02 : f32
    %13 = vector.broadcast %cst_10 : f32 to vector<8x1xf32>
    %14 = arith.mulf %12, %13 : vector<8x1xf32>
    %15 = vector.broadcast %14 : vector<8x1xf32> to vector<8x128xf32>
    %16 = arith.subf %8, %15 : vector<8x128xf32>
    %cst_11 = arith.constant 0.000000e+00 : f32
    %17 = vector.broadcast %cst_11 : f32 to vector<8x128xf32>
    %18 = arith.select %3, %16, %17 : vector<8x128xi1>, vector<8x128xf32>
    %19 = arith.mulf %18, %18 : vector<8x128xf32>
    %cst_12 = arith.constant dense<0.000000e+00> : vector<8xf32>
    %20 = vector.multi_reduction <add>, %19, %cst_12 [1] : vector<8x128xf32> to vector<8xf32>
    %21 = vector.shape_cast %20 : vector<8xf32> to vector<8x1xf32>
    %cst_13 = arith.constant 3.125000e-02 : f32
    %22 = vector.broadcast %cst_13 : f32 to vector<8x1xf32>
    %23 = arith.mulf %21, %22 : vector<8x1xf32>
    %cst_14 = arith.constant 9.99999974E-6 : f32
    %24 = vector.broadcast %cst_14 : f32 to vector<8x1xf32>
    %25 = arith.addf %23, %24 : vector<8x1xf32>
    %26 = math.rsqrt %25 : vector<8x1xf32>
    %27 = vector.broadcast %26 : vector<8x1xf32> to vector<8x128xf32>
    %28 = arith.mulf %18, %27 : vector<8x128xf32>
    %29 = vector.broadcast %9 : vector<1x128xf32> to vector<8x128xf32>
    %30 = arith.mulf %28, %29 : vector<8x128xf32>
    %31 = vector.broadcast %10 : vector<1x128xf32> to vector<8x128xf32>
    %32 = arith.addf %30, %31 : vector<8x128xf32>
    %cst_15 = arith.constant 0.000000e+00 : f32
    %33 = vector.broadcast %cst_15 : f32 to vector<8x128xf32>
    %34 = arith.maximumf %32, %33 : vector<8x128xf32>
    %c0_16 = arith.constant 0 : index
    %c0_17 = arith.constant 0 : index
    %35 = vector.load %arg6[%c0_16, %c0_17] : memref<128x128xf32, #tpu.memory_space<vmem>>, vector<128x128xf32>
    %cst_18 = arith.constant dense<0.000000e+00> : vector<8x128xf32>
    %36 = tpu.matmul %34, %35, %cst_18 {dimension_numbers = #tpu.dot_dimension_numbers<[1], [0], [0], [1], [0, 0, 1, 1], [], []>} : vector<8x128xf32>, vector<128x128xf32>, vector<8x128xf32> -> vector<8x128xf32>
    %c0_19 = arith.constant 0 : index
    %c0_20 = arith.constant 0 : index
    %37 = vector.load %arg7[%c0_19, %c0_20] : memref<1x128xf32, #tpu.memory_space<vmem>>, vector<1x128xf32>
    %38 = vector.broadcast %37 : vector<1x128xf32> to vector<8x128xf32>
    %39 = arith.addf %36, %38 : vector<8x128xf32>
    %c0_21 = arith.constant 0 : index
    %c0_22 = arith.constant 0 : index
    %40 = vector.load %arg8[%c0_21, %c0_22] : memref<1x128xf32, #tpu.memory_space<vmem>>, vector<1x128xf32>
    %c0_23 = arith.constant 0 : index
    %c0_24 = arith.constant 0 : index
    %41 = vector.load %arg9[%c0_23, %c0_24] : memref<1x128xf32, #tpu.memory_space<vmem>>, vector<1x128xf32>
    %cst_25 = arith.constant dense<0.000000e+00> : vector<8xf32>
    %42 = vector.multi_reduction <add>, %39, %cst_25 [1] : vector<8x128xf32> to vector<8xf32>
    %43 = vector.shape_cast %42 : vector<8xf32> to vector<8x1xf32>
    %cst_26 = arith.constant 3.125000e-02 : f32
    %44 = vector.broadcast %cst_26 : f32 to vector<8x1xf32>
    %45 = arith.mulf %43, %44 : vector<8x1xf32>
    %46 = vector.broadcast %45 : vector<8x1xf32> to vector<8x128xf32>
    %47 = arith.subf %39, %46 : vector<8x128xf32>
    %cst_27 = arith.constant 0.000000e+00 : f32
    %48 = vector.broadcast %cst_27 : f32 to vector<8x128xf32>
    %49 = arith.select %3, %47, %48 : vector<8x128xi1>, vector<8x128xf32>
    %50 = arith.mulf %49, %49 : vector<8x128xf32>
    %cst_28 = arith.constant dense<0.000000e+00> : vector<8xf32>
    %51 = vector.multi_reduction <add>, %50, %cst_28 [1] : vector<8x128xf32> to vector<8xf32>
    %52 = vector.shape_cast %51 : vector<8xf32> to vector<8x1xf32>
    %cst_29 = arith.constant 3.125000e-02 : f32
    %53 = vector.broadcast %cst_29 : f32 to vector<8x1xf32>
    %54 = arith.mulf %52, %53 : vector<8x1xf32>
    %cst_30 = arith.constant 9.99999974E-6 : f32
    %55 = vector.broadcast %cst_30 : f32 to vector<8x1xf32>
    %56 = arith.addf %54, %55 : vector<8x1xf32>
    %57 = math.rsqrt %56 : vector<8x1xf32>
    %58 = vector.broadcast %57 : vector<8x1xf32> to vector<8x128xf32>
    %59 = arith.mulf %49, %58 : vector<8x128xf32>
    %60 = vector.broadcast %40 : vector<1x128xf32> to vector<8x128xf32>
    %61 = arith.mulf %59, %60 : vector<8x128xf32>
    %62 = vector.broadcast %41 : vector<1x128xf32> to vector<8x128xf32>
    %63 = arith.addf %61, %62 : vector<8x128xf32>
    %cst_31 = arith.constant 0.000000e+00 : f32
    %64 = vector.broadcast %cst_31 : f32 to vector<8x128xf32>
    %65 = arith.maximumf %63, %64 : vector<8x128xf32>
    %c0_32 = arith.constant 0 : index
    %c0_33 = arith.constant 0 : index
    %66 = vector.load %arg10[%c0_32, %c0_33] : memref<128x128xf32, #tpu.memory_space<vmem>>, vector<128x128xf32>
    %cst_34 = arith.constant dense<0.000000e+00> : vector<8x128xf32>
    %67 = tpu.matmul %65, %66, %cst_34 {dimension_numbers = #tpu.dot_dimension_numbers<[1], [0], [0], [1], [0, 0, 1, 1], [], []>} : vector<8x128xf32>, vector<128x128xf32>, vector<8x128xf32> -> vector<8x128xf32>
    %c0_35 = arith.constant 0 : index
    %c0_36 = arith.constant 0 : index
    %68 = vector.load %arg11[%c0_35, %c0_36] : memref<1x128xf32, #tpu.memory_space<vmem>>, vector<1x128xf32>
    %69 = vector.broadcast %68 : vector<1x128xf32> to vector<8x128xf32>
    %70 = arith.addf %67, %69 : vector<8x128xf32>
    %71 = math.tanh %70 : vector<8x128xf32>
    %c0_37 = arith.constant 0 : index
    %c0_38 = arith.constant 0 : index
    %72 = vector.load %arg12[%c0_37, %c0_38] : memref<8x128xf32, #tpu.memory_space<vmem>>, vector<8x128xf32>
    tpu.vector_store %arg12[%c0_37, %c0_38], %71 {strides = array<i32>} : memref<8x128xf32, #tpu.memory_space<vmem>>, vector<8x128xf32>,
    return
  }
  func.func @transform_0(%arg0: i32) -> (i32, i32) {
    %c0_i32 = arith.constant 0 : i32
    %c0_i32_0 = arith.constant 0 : i32
    return %arg0, %c0_i32 : i32, i32
  }
  func.func @transform_1(%arg0: i32) -> (i32, i32) {
    %c0_i32 = arith.constant 0 : i32
    %c0_i32_0 = arith.constant 0 : i32
    %c0_i32_1 = arith.constant 0 : i32
    return %c0_i32, %c0_i32_0 : i32, i32
  }
  func.func @transform_2(%arg0: i32) -> (i32, i32) {
    %c0_i32 = arith.constant 0 : i32
    %c0_i32_0 = arith.constant 0 : i32
    %c0_i32_1 = arith.constant 0 : i32
    return %c0_i32, %c0_i32_0 : i32, i32
  }
  func.func @transform_3(%arg0: i32) -> (i32, i32) {
    %c0_i32 = arith.constant 0 : i32
    %c0_i32_0 = arith.constant 0 : i32
    %c0_i32_1 = arith.constant 0 : i32
    return %c0_i32, %c0_i32_0 : i32, i32
  }
  func.func @transform_4(%arg0: i32) -> (i32, i32) {
    %c0_i32 = arith.constant 0 : i32
    %c0_i32_0 = arith.constant 0 : i32
    %c0_i32_1 = arith.constant 0 : i32
    return %c0_i32, %c0_i32_0 : i32, i32
  }
  func.func @transform_5(%arg0: i32) -> (i32, i32) {
    %c0_i32 = arith.constant 0 : i32
    %c0_i32_0 = arith.constant 0 : i32
    %c0_i32_1 = arith.constant 0 : i32
    return %c0_i32, %c0_i32_0 : i32, i32
  }
  func.func @transform_6(%arg0: i32) -> (i32, i32) {
    %c0_i32 = arith.constant 0 : i32
    %c0_i32_0 = arith.constant 0 : i32
    %c0_i32_1 = arith.constant 0 : i32
    return %c0_i32, %c0_i32_0 : i32, i32
  }
  func.func @transform_7(%arg0: i32) -> (i32, i32) {
    %c0_i32 = arith.constant 0 : i32
    %c0_i32_0 = arith.constant 0 : i32
    %c0_i32_1 = arith.constant 0 : i32
    return %c0_i32, %c0_i32_0 : i32, i32
  }
  func.func @transform_8(%arg0: i32) -> (i32, i32) {
    %c0_i32 = arith.constant 0 : i32
    %c0_i32_0 = arith.constant 0 : i32
    %c0_i32_1 = arith.constant 0 : i32
    return %c0_i32, %c0_i32_0 : i32, i32
  }
  func.func @transform_9(%arg0: i32) -> (i32, i32) {
    %c0_i32 = arith.constant 0 : i32
    %c0_i32_0 = arith.constant 0 : i32
    %c0_i32_1 = arith.constant 0 : i32
    return %c0_i32, %c0_i32_0 : i32, i32
  }
  func.func @transform_10(%arg0: i32) -> (i32, i32) {
    %c0_i32 = arith.constant 0 : i32
    %c0_i32_0 = arith.constant 0 : i32
    %c0_i32_1 = arith.constant 0 : i32
    return %c0_i32, %c0_i32_0 : i32, i32
  }
  func.func @transform_11(%arg0: i32) -> (i32, i32) {
    %c0_i32 = arith.constant 0 : i32
    %c0_i32_0 = arith.constant 0 : i32
    return %arg0, %c0_i32 : i32, i32
  }
}

</mosaic_0001>

<bundles_post_ra>
// kernel: tpu_custom_call.1
= control target key start
LH: loop header
LB: loop body
LE: loop exit
PB: predicated region body
PF: predicated region fallthrough
CT: control target
= control target key end

     0   :  { %16 = vsyncpa [#allocation3], 0  ;;  %s845_s0 = inlined_call_operand.hbm [shape: f32[8,16], index: 0, kind: input, shape index: {}]   ;;  %s846_s1 = inlined_call_operand.hbm [shape: f32[16,128], index: 1, kind: input, shape index: {}]   ;;  %s847_s2 = inlined_call_operand.vmem [shape: f32[1,128], index: 2, kind: input, shape index: {}]   ;;  %s848_s3 = inlined_call_operand.vmem [shape: f32[1,128], index: 3, kind: input, shape index: {}]   ;;  %s849_s4 = inlined_call_operand.vmem [shape: f32[1,128], index: 4, kind: input, shape index: {}]   ;;  %s850_s5 = inlined_call_operand.hbm [shape: f32[128,128], index: 5, kind: input, shape index: {}]   ;;  %s851_s6 = inlined_call_operand.vmem [shape: f32[1,128], index: 6, kind: input, shape index: {}]   ;;  %s852_s7 = inlined_call_operand.vmem [shape: f32[1,128], index: 7, kind: input, shape index: {}]   ;;  %s853_s8 = inlined_call_operand.vmem [shape: f32[1,128], index: 8, kind: input, shape index: {}]   ;;  %s854_s9 = inlined_call_operand.hbm [shape: f32[128,128], index: 9, kind: input, shape index: {}]   ;;  %s855_s10 = inlined_call_operand.vmem [shape: f32[1,128], index: 10, kind: input, shape index: {}]   ;;  %s856_s11 = inlined_call_operand.hbm [shape: f32[8,128], index: 11, kind: output, shape index: {}]  }
   0x1   :  { %17 = vsyncpa [#allocation6], 0 }
   0x2   :  { %18 = vsyncpa [#allocation9], 0 }
   0x3   :  { %19 = vsyncpa [#allocation4], 0  ;;  %s687_s17 = smov [#allocation5]  }
   0x4   :  { %s35_s18 = sshll.u32 %s687_s17, 4  ;;  %s36_s18 = int_to_ptr.vmem [resolvable:$true] %s35_s18 }
   0x5   :  { %s587_s19 = scalar_lea.vmem %s36_s18, 256  ;;  %p592_p1 = scmp.lt.s32.totalorder %s36_s18, %s36_s18 }
   0x6   :  { %p588_p0 = scmp.ne.s32.totalorder %s36_s18, %s587_s19  ;;  %p593_p2 = scmp.lt.s32.totalorder %s587_s19, %s587_s19 }
   0x8   :  { %p594_p3 = por %p593_p2, %p592_p1 }
   0xa   :  { %p595_p4 = pnand %p594_p3, %p588_p0 }
   0xc   :  { %598 = shalt.err (!%p595_p4)
}
   0xd   :  { %s688_s20 = smov 128   ;;  %s689_s21 = smov 8  }
   0xe   :  { %41 = dma.hbm_to_vmem [thread:$0]  %s846_s1, 256, %s36_s18, [#allocation6], %s688_s20, %s688_s20, %s689_s21  }
   0xf   :  { %s690_s24 = smov [#allocation2]   ;;  %s691_s26 = smov [#allocation7]  }
  0x10   :  { %s26_s25 = sshll.u32 %s690_s24, 4  ;;  %s53_s27 = sshll.u32 %s691_s26, 4  ;;  %s27_s25 = int_to_ptr.vmem [resolvable:$true] %s26_s25  ;;  %s54_s27 = int_to_ptr.vmem [resolvable:$true] %s53_s27 }
  0x11   :  { %s607_s28 = scalar_lea.vmem %s27_s25, 128  ;;  %p612_p6 = scmp.lt.s32.totalorder %s27_s25, %s27_s25 }
  0x12   :  { %p608_p5 = scmp.ne.s32.totalorder %s27_s25, %s607_s28  ;;  %p613_p7 = scmp.lt.s32.totalorder %s607_s28, %s607_s28 }
  0x14   :  { %p614_p8 = por %p613_p7, %p612_p6 }
  0x16   :  { %p615_p9 = pnand %p614_p8, %p608_p5 }
  0x18   :  { %618 = shalt.err (!%p615_p9)
}
  0x19   :  { %29 = dma.hbm_to_vmem [thread:$0]  %s845_s0, 128, %s27_s25, [#allocation3]  }
  0x1a   :  { %s627_s12 = scalar_lea.vmem %s54_s27, 2048  ;;  %p632_p11 = scmp.lt.s32.totalorder %s54_s27, %s54_s27 }
  0x1b   :  { %p628_p10 = scmp.ne.s32.totalorder %s54_s27, %s627_s12  ;;  %p633_p12 = scmp.lt.s32.totalorder %s627_s12, %s627_s12 }
  0x1d   :  { %p634_p13 = por %p633_p12, %p632_p11 }
  0x1f   :  { %p635_p0 = pnand %p634_p13, %p628_p10 }
  0x21   :  { %638 = shalt.err (!%p635_p0)
}
  0x22   :  { %59 = dma.hbm_to_vmem [thread:$0]  %s850_s5, 2048, %s54_s27, [#allocation6], %s688_s20, %s688_s20, %s689_s21  }
  0x23   :  { %s692_s14 = smov [#allocation8]  }
  0x24   :  { %s71_s15 = sshll.u32 %s692_s14, 4  ;;  %s72_s15 = int_to_ptr.vmem [resolvable:$true] %s71_s15 }
  0x25   :  { %s647_s16 = scalar_lea.vmem %s72_s15, 2048  ;;  %p652_p2 = scmp.lt.s32.totalorder %s72_s15, %s72_s15 }
  0x26   :  { %p648_p1 = scmp.ne.s32.totalorder %s72_s15, %s647_s16  ;;  %p653_p3 = scmp.lt.s32.totalorder %s647_s16, %s647_s16 }
  0x28   :  { %p654_p4 = por %p653_p3, %p652_p2 }
  0x2a   :  { %p655_p5 = pnand %p654_p4, %p648_p1 }
  0x2c   :  { %658 = shalt.err (!%p655_p5)
}
  0x2d   :  { %77 = dma.hbm_to_vmem [thread:$0]  %s854_s9, 2048, %s72_s15, [#allocation9], %s688_s20, %s688_s20, %s689_s21  }
  0x2e   :  { %679 = dma.done.wait [#allocation3], 128  }
  0x2f   :  { %680 = vsyncadd [#allocation3], 4294967168 }
  0x30   :  { %681 = dma.done.wait [#allocation6], 2304  }
  0x31   :  { %682 = vsyncadd [#allocation6], 4294964992 }
  0x32   :  { %683 = dma.done.wait [#allocation9], 2048  }
  0x33   :  { %684 = vsyncadd [#allocation9], 4294965248  ;;  %v693_v0 = vmov 0.0   ;;  %vm694_vm0 = vmmov 0   ;;  %v97_v1 = vld [vmem:[#allocation5 + $0x8] sm:$0xff]  ;;  %v96_v2 = vld [vmem:[#allocation5] sm:$0xff]  ;;  %v93_v11 = vlaneseq }
  0x34   :  { %487 = vmatprep.subr.mxu0 %v693_v0  ;;  %491 = vmatprep.mubr.msk.f32.mxu0 %vm694_vm0, %v693_v0  ;;  %v92_v3 = vld [vmem:[#allocation2] sm:$0xff]  ;;  %vm105_vm1 = vcmask 130048   ;;  %v223_v8 = vld [vmem:[#allocation7 + $0x78] sm:$0xff]  ;;  %v222_v9 = vld [vmem:[#allocation7 + $0x70] sm:$0xff]  ;;  %s695_s26 = smov [#allocation10]  }
  0x35   :  { %494 = vmatprep.subr.mxu1 %v693_v0  ;;  %526 = vmatprep.mubr.msk.f32.mxu1 %vm694_vm0, %v693_v0  ;;  %v442_v4 = vld [vmem:[%s847_s2] ss:$0 sm:$0xff]  ;;  %v790_v12 = vand.u32 127, %v93_v11  ;;  %v220_v18 = vld [vmem:[#allocation7 + $0x60] sm:$0xff]  ;;  %v219_v19 = vld [vmem:[#allocation7 + $0x58] sm:$0xff]  ;;  %s431_s27 = sshll.u32 %s695_s26, 4  ;;  %s432_s27 = int_to_ptr.vmem [resolvable:$true] %s431_s27 }
  0x36   :  { %488 = vmatpush3.msra.mxu0 %v97_v1  ;;  %495 = vmatpush3.msra.mxu1 %v223_v8  ;;  %v221_v10 = vld [vmem:[#allocation7 + $0x68] sm:$0xff]  ;;  %v218_v20 = vld [vmem:[#allocation7 + $0x50] sm:$0xff]  ;;  %v216_v22 = vld [vmem:[#allocation7 + $0x40] sm:$0xff]  ;;  %p664_p7 = scmp.lt.s32.totalorder %s432_s27, %s432_s27 }
  0x37   :  { %489 = vmatprep.subr.mxu0 %v693_v0  ;;  %496 = vmatprep.subr.mxu1 %v693_v0  ;;  %vm95_vm2 = vcmp.lt.s32.totalorder %v790_v12, 32  ;;  %v217_v21 = vld [vmem:[#allocation7 + $0x48] sm:$0xff]  ;;  %v215_v23 = vld [vmem:[#allocation7 + $0x38] sm:$0xff]  ;;  %v214_v24 = vld [vmem:[#allocation7 + $0x30] sm:$0xff] }
  0x38   :  { %490 = vmatpush3.msra.mxu0 %v96_v2  ;;  %497 = vmatpush3.msra.mxu1 %v222_v9  ;;  %v213_v25 = vld [vmem:[#allocation7 + $0x28] sm:$0xff]  ;;  %v212_v26 = vld [vmem:[#allocation7 + $0x20] sm:$0xff]  ;;  %v211_v27 = vld [vmem:[#allocation7 + $0x18] sm:$0xff] }
  0x39   :  { %492 = vmatmul.mubr.msk.f32.vlgmr.msra.gmra.mxu0 %vm105_vm1, %v92_v3  ;;  %529 = vmatprep.subr.mxu0 %v693_v0  ;;  %v210_v28 = vld [vmem:[#allocation7 + $0x10] sm:$0xff]  ;;  %v209_v29 = vld [vmem:[#allocation7 + $0x8] sm:$0xff]  ;;  %v208_v30 = vld [vmem:[#allocation7] sm:$0xff] }
  0x3a   :  { %561 = vmatprep.mubr.msk.f32.mxu0 %vm694_vm0, %v693_v0  ;;  %498 = vmatprep.subr.mxu1 %v693_v0  ;;  %v444_v35 = vld [vmem:[%s848_s3] ss:$0 sm:$0xff]  ;;  %v345_v45 = vld [vmem:[#allocation8 + $0x78] sm:$0xff]  ;;  %v344_v46 = vld [vmem:[#allocation8 + $0x70] sm:$0xff] }
  0x3b   :  { %499 = vmatpush3.msra.mxu1 %v221_v10  ;;  %v445_v37 = vld [vmem:[%s849_s4] ss:$0 sm:$0xff]  ;;  %530 = vmatpush3.msra.mxu0 %v345_v45  ;;  %v342_v53 = vld [vmem:[#allocation8 + $0x60] sm:$0xff]  ;;  %v341_v54 = vld [vmem:[#allocation8 + $0x58] sm:$0xff] }
  0x3c   :  { %500 = vmatprep.subr.mxu1 %v693_v0  ;;  %v446_v41 = vld [vmem:[%s851_s6] ss:$0 sm:$0xff]  ;;  %531 = vmatprep.subr.mxu0 %v693_v0  ;;  %v340_v55 = vld [vmem:[#allocation8 + $0x50] sm:$0xff]  ;;  %v338_v57 = vld [vmem:[#allocation8 + $0x40] sm:$0xff] }
  0x3d   :  { %501 = vmatpush3.msra.mxu1 %v220_v18  ;;  %v343_v47 = vld [vmem:[#allocation8 + $0x68] sm:$0xff]  ;;  %532 = vmatpush3.msra.mxu0 %v344_v46  ;;  %v337_v58 = vld [vmem:[#allocation8 + $0x38] sm:$0xff]  ;;  %v336_v59 = vld [vmem:[#allocation8 + $0x30] sm:$0xff] }
  0x3e   :  { %502 = vmatprep.subr.mxu1 %v693_v0  ;;  %533 = vmatprep.subr.mxu0 %v693_v0  ;;  %v339_v56 = vld [vmem:[#allocation8 + $0x48] sm:$0xff]  ;;  %v334_v61 = vld [vmem:[#allocation8 + $0x20] sm:$0xff]  ;;  %v333_v62 = vld [vmem:[#allocation8 + $0x18] sm:$0xff] }
  0x3f   :  { %503 = vmatpush3.msra.mxu1 %v219_v19  ;;  %534 = vmatpush3.msra.mxu0 %v343_v47  ;;  %v335_v60 = vld [vmem:[#allocation8 + $0x28] sm:$0xff]  ;;  %v332_v63 = vld [vmem:[#allocation8 + $0x10] sm:$0xff]  ;;  %v330_v2 = vld [vmem:[#allocation8] sm:$0xff] }
  0x40   :  { %504 = vmatprep.subr.mxu1 %v693_v0  ;;  %535 = vmatprep.subr.mxu0 %v693_v0  ;;  %v331_v1 = vld [vmem:[#allocation8 + $0x8] sm:$0xff] }
  0x41   :  { %505 = vmatpush3.msra.mxu1 %v218_v20  ;;  %536 = vmatpush3.msra.mxu0 %v342_v53  ;;  %v448_v9 = vld [vmem:[%s853_s8] ss:$0 sm:$0xff] }
  0x42   :  { %506 = vmatprep.subr.mxu1 %v693_v0  ;;  %537 = vmatprep.subr.mxu0 %v693_v0 }
  0x43   :  { %507 = vmatpush3.msra.mxu1 %v217_v21  ;;  %538 = vmatpush3.msra.mxu0 %v341_v54 }
  0x44   :  { %508 = vmatprep.subr.mxu1 %v693_v0  ;;  %539 = vmatprep.subr.mxu0 %v693_v0 }
  0x45   :  { %509 = vmatpush3.msra.mxu1 %v216_v22  ;;  %540 = vmatpush3.msra.mxu0 %v340_v55 }
  0x46   :  { %510 = vmatprep.subr.mxu1 %v693_v0  ;;  %541 = vmatprep.subr.mxu0 %v693_v0 }
  0x47   :  { %511 = vmatpush3.msra.mxu1 %v215_v23  ;;  %542 = vmatpush3.msra.mxu0 %v339_v56 }
  0x48   :  { %512 = vmatprep.subr.mxu1 %v693_v0  ;;  %543 = vmatprep.subr.mxu0 %v693_v0 }
  0x49   :  { %513 = vmatpush3.msra.mxu1 %v214_v24  ;;  %544 = vmatpush3.msra.mxu0 %v338_v57 }
  0x4a   :  { %514 = vmatprep.subr.mxu1 %v693_v0  ;;  %545 = vmatprep.subr.mxu0 %v693_v0 }
  0x4b   :  { %515 = vmatpush3.msra.mxu1 %v213_v25  ;;  %546 = vmatpush3.msra.mxu0 %v337_v58 }
  0x4c   :  { %516 = vmatprep.subr.mxu1 %v693_v0  ;;  %547 = vmatprep.subr.mxu0 %v693_v0 }
  0x4d   :  { %517 = vmatpush3.msra.mxu1 %v212_v26  ;;  %548 = vmatpush3.msra.mxu0 %v336_v59 }
  0x4e   :  { %518 = vmatprep.subr.mxu1 %v693_v0  ;;  %549 = vmatprep.subr.mxu0 %v693_v0 }
  0x4f   :  { %519 = vmatpush3.msra.mxu1 %v211_v27  ;;  %550 = vmatpush3.msra.mxu0 %v335_v60 }
  0x50   :  { %520 = vmatprep.subr.mxu1 %v693_v0  ;;  %551 = vmatprep.subr.mxu0 %v693_v0 }
  0x51   :  { %521 = vmatpush3.msra.mxu1 %v210_v28  ;;  %552 = vmatpush3.msra.mxu0 %v334_v61 }
  0x52   :  { %522 = vmatprep.subr.mxu1 %v693_v0  ;;  %553 = vmatprep.subr.mxu0 %v693_v0 }
  0x53   :  { %523 = vmatpush3.msra.mxu1 %v209_v29  ;;  %554 = vmatpush3.msra.mxu0 %v333_v62 }
  0x54   :  { %524 = vmatprep.subr.mxu1 %v693_v0  ;;  %555 = vmatprep.subr.mxu0 %v693_v0 }
  0x55   :  { %525 = vmatpush3.msra.mxu1 %v208_v30  ;;  %556 = vmatpush3.msra.mxu0 %v332_v63 }
  0x56   :  { %557 = vmatprep.subr.mxu0 %v693_v0 }
  0x57   :  { %558 = vmatpush3.msra.mxu0 %v331_v1 }
  0x58   :  { %559 = vmatprep.subr.mxu0 %v693_v0  ;;  %v449_v0 = vld [vmem:[%s855_s10] ss:$0 sm:$0xff] }
  0x59   :  { %560 = vmatpush3.msra.mxu0 %v330_v2 }
  0xf9   :  { %v175_v5 = vpop.f32.mrf.mxu0 }
  0xfa   :  { %v176_v6 = vadd.f32 %v442_v4, %v175_v5 }
  0xfb   :  { %v493_v7 = vpop.f32.mrf.mxu0 }
  0xfc   :  { %181 = vadd.xlane.f32.xlu0 %v176_v6  ;;  %v447_v7 = vld [vmem:[%s852_s7] ss:$0 sm:$0xff]  ;;  %s659_s7 = scalar_lea.vmem %s432_s27, 128 }
  0xfd   :  { %p660_p6 = scmp.ne.s32.totalorder %s432_s27, %s659_s7  ;;  %p665_p8 = scmp.lt.s32.totalorder %s659_s7, %s659_s7 }
  0xff   :  { %p666_p9 = por %p665_p8, %p664_p7 }
 0x101   :  { %p667_p10 = pnand %p666_p9, %p660_p6 }
 0x185   :  { %v182_v13 = vpop.xlane.xlu0 %181 }
 0x186   :  { %v183_v14 = vmul.f32 0.03125, %v182_v13 }
 0x188   :  { %v184_v15 = vsub.f32 %v176_v6, %v183_v14 }
 0x18a   :  { %v185_v16 = vsel %vm95_vm2, %v184_v15, 0.0 }
 0x18b   :  { %v186_v17 = vmul.f32 %v185_v16, %v185_v16 }
 0x18d   :  { %187 = vadd.xlane.f32.xlu0 %v186_v17 }
 0x216   :  { %v188_v31 = vpop.xlane.xlu0 %187 }
 0x217   :  { %v189_v32 = vmul.f32 0.03125, %v188_v31 }
 0x219   :  { %v190_v33 = vadd.f32 1e-05, %v189_v32 }
 0x21b   :  { %573 = vrsqrt.f32 %v190_v33 }
 0x228   :  { %v574_v34 = vpop.eup %573 }
 0x229   :  { %v192_v36 = vmul.f32 %v574_v34, %v185_v16 }
 0x22b   :  { %v199_v38 = vmul.f32 %v444_v35, %v192_v36 }
 0x22d   :  { %v206_v39 = vadd.f32 %v445_v37, %v199_v38 }
 0x22f   :  { %v207_v40 = vmax.f32 %v206_v39, 0.0 }
 0x231   :  { %527 = vmatmul.mubr.f32.vlgmr.msra.gmra.mxu1 %v207_v40 }
 0x2f1   :  { %v297_v42 = vpop.f32.mrf.mxu1 }
 0x2f2   :  { %v298_v43 = vadd.f32 %v446_v41, %v297_v42 }
 0x2f3   :  { %v528_v44 = vpop.f32.mrf.mxu1 }
 0x2f4   :  { %303 = vadd.xlane.f32.xlu1 %v298_v43 }
 0x37d   :  { %v304_v48 = vpop.xlane.xlu1 %303 }
 0x37e   :  { %v305_v49 = vmul.f32 0.03125, %v304_v48 }
 0x380   :  { %v306_v50 = vsub.f32 %v298_v43, %v305_v49 }
 0x382   :  { %v307_v51 = vsel %vm95_vm2, %v306_v50, 0.0 }
 0x383   :  { %v308_v52 = vmul.f32 %v307_v51, %v307_v51 }
 0x385   :  { %309 = vadd.xlane.f32.xlu1 %v308_v52 }
 0x40e   :  { %v310_v3 = vpop.xlane.xlu1 %309 }
 0x40f   :  { %v311_v4 = vmul.f32 0.03125, %v310_v3 }
 0x411   :  { %v312_v5 = vadd.f32 1e-05, %v311_v4 }
 0x413   :  { %575 = vrsqrt.f32 %v312_v5 }
 0x420   :  { %v576_v6 = vpop.eup %575 }
 0x421   :  { %v314_v8 = vmul.f32 %v576_v6, %v307_v51 }
 0x423   :  { %v321_v10 = vmul.f32 %v447_v7, %v314_v8 }
 0x425   :  { %v328_v11 = vadd.f32 %v448_v9, %v321_v10 }
 0x427   :  { %v329_v12 = vmax.f32 %v328_v11, 0.0 }
 0x429   :  { %562 = vmatmul.mubr.f32.vlgmr.msra.gmra.mxu0 %v329_v12 }
 0x4e9   :  { %v419_v13 = vpop.f32.mrf.mxu0 }
 0x4ea   :  { %v420_v14 = vadd.f32 %v449_v0, %v419_v13 }
 0x4eb   :  { %v563_v15 = vpop.f32.mrf.mxu0 }
 0x4ec   :  { %577 = vtanh.f32 %v420_v14 }
 0x4f9   :  { %v578_v16 = vpop.eup %577 }
 0x4fa   :  { %424 = vst [vmem:[#allocation10] sm:$0xff] %v578_v16 }
 0x4fb   :  { %670 = shalt.err (!%p667_p10)
}
 0x4fc   :  { %434 = dma.vmem_to_hbm [thread:$0]  %s432_s27, 128, %s856_s11, [#allocation4]  }
 0x4fd   :  { %685 = dma.done.wait [#allocation4], 128  }
 0x4fe   :  { %686 = vsyncadd [#allocation4], 4294967168 }
 0x4ff   :  { %438 = vsyncpa [#allocation3], 1 }
 0x500   :  { %439 = vsyncpa [#allocation6], 1 }
 0x501   :  { %440 = vsyncpa [#allocation9], 1 }
 0x502   :  { %441 = vsyncpa [#allocation4], 1 }

</bundles_post_ra>
